<compile_context>
chip_gen: v7x
topology: tpu7x:2x2x1
jax: 0.10.0
libtpu: 0.0.40
codegen_flags: <defaults>
</compile_context>

<pallas_src>
import jax
import jax.numpy as jnp
from jax import lax
from jax.experimental import pallas as pl
from jax.experimental.pallas import tpu as pltpu


def _round_up(x, m):
    return ((x + m - 1) // m) * m


def linear_kernel(w_ref, b_ref, x_ref, oT_ref):
    """One batch tile of y^T = W @ x^T + b, computed on the MXU.

    w_ref:  VMEM (N, K) f32   -- whole weight, resident across the grid
    b_ref:  VMEM (N, 1) f32   -- bias column, broadcast along lanes
    x_ref:  VMEM (TB, K)      -- natural-layout input tile (batch on sublanes)
    oT_ref: VMEM (N, TB) f32  -- lane-dense output tile (batch on lanes)
    """
    x = x_ref[...].astype(jnp.float32)
    # (N, K) x (TB, K), contracting K of both operands -> (N, TB).
    yT = lax.dot_general(
        w_ref[...],
        x,
        dimension_numbers=(((1,), (1,)), ((), ())),
        preferred_element_type=jnp.float32,
    )
    # Single fused store; bias (N, 1) broadcasts along the lane (batch) axis.
    oT_ref[...] = yT + b_ref[...]


def linear(x, weight, bias, *, tb_max=8192, min_tiles=8):
    """x: (B, K); weight: (N, K); bias: (N,) -> (B, N) float32 (nn.Linear)."""
    B, K = x.shape
    N, K2 = weight.shape
    assert K == K2 and bias.shape == (N,)

    if B == 0:
        return jnp.zeros((0, N), jnp.float32)

    # Batch-tile selection:
    #  * B <= 128: one full-array block (no padding / masking anywhere).
    #  * otherwise: lane-dense multiple of 128, aiming for >= `min_tiles` grid
    #    steps (megacore) but capped at tb_max (VMEM / v5e budget).  A partial
    #    last block is handled by Pallas (padded reads feed only the output
    #    columns that are masked off on write-back).
    if B <= 128:
        tb = B
    else:
        tb = _round_up(pl.cdiv(B, min_tiles), 128)
        tb = max(128, min(tb, _round_up(tb_max, 128)))
    num_tiles = pl.cdiv(B, tb)

    w32 = weight.astype(jnp.float32)              # (N, K), 72 bytes
    b32 = bias.astype(jnp.float32).reshape(N, 1)  # (N, 1)

    yT = pl.pallas_call(
        linear_kernel,
        out_shape=jax.ShapeDtypeStruct((N, B), jnp.float32),
        grid=(num_tiles,),
        in_specs=[
            pl.BlockSpec((N, K), lambda i: (0, 0)),    # weight (resident)
            pl.BlockSpec((N, 1), lambda i: (0, 0)),    # bias   (resident)
            pl.BlockSpec((tb, K), lambda i: (i, 0)),   # x tile, natural layout
        ],
        out_specs=pl.BlockSpec((N, tb), lambda i: (0, i)),  # lane-dense y^T tile
        compiler_params=pltpu.CompilerParams(
            dimension_semantics=("parallel",),
        ),
    )(w32, b32, x)

    # Only the tiny (8 B / batch element) output is re-laid-out on the wrapper
    # side, matching nn.Linear's (B, N) convention.
    return yT.T


if __name__ == "__main__":
    # Deterministic parameters, matching the PyTorch module's __init__:
    #   weight = arange(18).reshape(2, 9).float(), bias = zeros(2)
    weight = jnp.arange(18, dtype=jnp.float32).reshape(2, 9)
    bias = jnp.zeros((2,), dtype=jnp.float32)

    # Small deterministic input: batch of 8 vectors of size 9.  Values are
    # snapped to bf16-representable numbers so the check is insensitive to the
    # MXU's default f32 matmul precision.
    key = jax.random.PRNGKey(0)
    x = jax.random.normal(key, (8, 9), dtype=jnp.float32)
    x = x.astype(jnp.bfloat16).astype(jnp.float32)

    y = jax.block_until_ready(linear(x, weight, bias))

    # Sanity check against a plain-JAX reference of the same math.
    y_ref = x @ weight.T + bias
    assert y.shape == (8, 2)
    assert jnp.allclose(y, y_ref, atol=1e-3, rtol=1e-4)

    print("KERNEL_OK")
</pallas_src>

<mosaic_0001>
module attributes {stable_mosaic.version = 11 : i64} {
  func.func @linear_kernel(%arg0: i32, %arg1: memref<2x9xf32, #tpu.memory_space<vmem>>, %arg2: memref<2x1xf32, #tpu.memory_space<vmem>>, %arg3: memref<8x9xf32, #tpu.memory_space<vmem>>, %arg4: memref<2x8xf32, #tpu.memory_space<vmem>>) attributes {dimension_semantics = [#tpu.dimension_semantics<parallel>], iteration_bounds = array<i64: 1>, scalar_prefetch = 0 : i64, scratch_operands = 0 : i64, tpu.core_type = #tpu.core_type<tc>, window_params = [{pipeline_mode = #tpu.pipeline_mode<synchronous>, transform_indices = @transform_0, window_bounds = array<i64: 2, 9>}, {pipeline_mode = #tpu.pipeline_mode<synchronous>, transform_indices = @transform_1, window_bounds = array<i64: 2, 1>}, {transform_indices = @transform_2, window_bounds = array<i64: 8, 9>}, {transform_indices = @transform_3, window_bounds = array<i64: 2, 8>}]} {
    %c0 = arith.constant 0 : index
    %c0_0 = arith.constant 0 : index
    %0 = vector.load %arg3[%c0, %c0_0] : memref<8x9xf32, #tpu.memory_space<vmem>>, vector<8x9xf32>
    %c0_1 = arith.constant 0 : index
    %c0_2 = arith.constant 0 : index
    %1 = vector.load %arg1[%c0_1, %c0_2] : memref<2x9xf32, #tpu.memory_space<vmem>>, vector<2x9xf32>
    %cst = arith.constant dense<0.000000e+00> : vector<2x8xf32>
    %2 = tpu.matmul %1, %0, %cst {dimension_numbers = #tpu.dot_dimension_numbers<[1], [1], [0], [0], [0, 0, 1, 0], [], []>} : vector<2x9xf32>, vector<8x9xf32>, vector<2x8xf32> -> vector<2x8xf32>
    %c0_3 = arith.constant 0 : index
    %c0_4 = arith.constant 0 : index
    %3 = vector.load %arg2[%c0_3, %c0_4] : memref<2x1xf32, #tpu.memory_space<vmem>>, vector<2x1xf32>
    %4 = vector.broadcast %3 : vector<2x1xf32> to vector<2x8xf32>
    %5 = arith.addf %2, %4 : vector<2x8xf32>
    %c0_5 = arith.constant 0 : index
    %c0_6 = arith.constant 0 : index
    %6 = vector.load %arg4[%c0_5, %c0_6] : memref<2x8xf32, #tpu.memory_space<vmem>>, vector<2x8xf32>
    tpu.vector_store %arg4[%c0_5, %c0_6], %5 {strides = array<i32>} : memref<2x8xf32, #tpu.memory_space<vmem>>, vector<2x8xf32>,
    return
  }
  func.func @transform_0(%arg0: i32) -> (i32, i32) {
    %c0_i32 = arith.constant 0 : i32
    %c0_i32_0 = arith.constant 0 : i32
    %c0_i32_1 = arith.constant 0 : i32
    return %c0_i32, %c0_i32_0 : i32, i32
  }
  func.func @transform_1(%arg0: i32) -> (i32, i32) {
    %c0_i32 = arith.constant 0 : i32
    %c0_i32_0 = arith.constant 0 : i32
    %c0_i32_1 = arith.constant 0 : i32
    return %c0_i32, %c0_i32_0 : i32, i32
  }
  func.func @transform_2(%arg0: i32) -> (i32, i32) {
    %c0_i32 = arith.constant 0 : i32
    %c0_i32_0 = arith.constant 0 : i32
    return %arg0, %c0_i32 : i32, i32
  }
  func.func @transform_3(%arg0: i32) -> (i32, i32) {
    %c0_i32 = arith.constant 0 : i32
    %c0_i32_0 = arith.constant 0 : i32
    return %c0_i32, %arg0 : i32, i32
  }
}

</mosaic_0001>

<bundles_post_ra>
// kernel: tpu_custom_call.1
= control target key start
LH: loop header
LB: loop body
LE: loop exit
PB: predicated region body
PF: predicated region fallthrough
CT: control target
= control target key end

     0   :  { %vm23_vm0 = vcmask 72704   ;;  %v154_v1 = vmov 0.0   ;;  %vm155_vm1 = vmmov 0   ;;  %s199_s0 = inlined_call_operand.vmem [shape: f32[2,9], index: 0, kind: input, shape index: {}]   ;;  %s200_s1 = inlined_call_operand.vmem [shape: f32[2,1], index: 1, kind: input, shape index: {}]   ;;  %s201_s2 = inlined_call_operand.vmem [shape: f32[8,9], index: 2, kind: input, shape index: {}]   ;;  %s202_s3 = inlined_call_operand.hbm [shape: f32[2,8], index: 3, kind: output, shape index: {}]  }
   0x1   :  { %v15_v0 = vld [vmem:[%s201_s2] sm:$0xff]  ;;  %120 = vmatprep.subr.mxu0 %v154_v1  ;;  %122 = vmatprep.mubr.msk.f32.mxu0 %vm155_vm1, %v154_v1 }
   0x2   :  { %v17_v2 = vld [vmem:[%s200_s1] sm:$0x3] }
   0x3   :  { %8 = vsyncpa [#allocation3], 0  ;;  %121 = vmatpush3.xpose.msk.msra.mxu0 %vm23_vm0, %v15_v0  ;;  %v16_v3 = vld [vmem:[%s199_s0] sm:$0x3]  ;;  %v156_v4 = vmov 0   ;;  %s157_s2 = smov [#allocation2]  }
   0x4   :  { %129 = vset.pattern.permute.xlu0 %v156_v4  ;;  %s108_s18 = sshll.u32 %s157_s2, 4  ;;  %vm100_vm2 = vcmask 58368   ;;  %s109_s18 = int_to_ptr.vmem [resolvable:$true] %s108_s18 }
   0x5   :  { %20 = vperm.xlu0 %129, %v17_v2   ;;  %s130_s1 = scalar_lea.vmem %s109_s18, 32  ;;  %p135_p1 = scmp.lt.s32.totalorder %s109_s18, %s109_s18 }
   0x6   :  { %123 = vmatmul.mubr.msk.f32.vlgmr.msra.gmra.mrb[0].mxu0 %vm23_vm0, %v16_v3  ;;  %p131_p0 = scmp.ne.s32.totalorder %s109_s18, %s130_s1  ;;  %p136_p2 = scmp.lt.s32.totalorder %s130_s1, %s130_s1 }
   0x8   :  { %p137_p3 = por %p136_p2, %p135_p1 }
   0xa   :  { %p138_p4 = pnand %p137_p3, %p131_p0 }
  0x84   :  { %v21_v5 = vpop.permute.xlu0 %20 }
  0xd9   :  { %v96_v6 = vpop.f32.mrb[0].mxu0 }
  0xda   :  { %v97_v7 = vadd.f32 %v96_v6, %v21_v5  ;;  %v124_v8 = vpop.f32.mrb[1].mxu0 }
  0xdc   :  { %101 = vst.msk [vmem:[#allocation2] sm:$0x3] %vm100_vm2, %v97_v7 }
  0xdd   :  { %141 = shalt.err (!%p138_p4)
}
  0xde   :  { %s142_s20 = scalar_lea.hbm %s202_s3, 32 }
  0xdf   :  { %p143_p5 = scmp.ne.s32.totalorder %s202_s3, %s142_s20  ;;  %p146_p6 = scmp.lt.u32.totalorder %s142_s20, %s202_s3 }
  0xe1   :  { %p148_p7 = pnand %p146_p6, %p143_p5 }
  0xe3   :  { %151 = shalt.err (!%p148_p7)
}
  0xe4   :  { %111 = dma.vmem_to_hbm [thread:$0]  %s109_s18, 32, %s202_s3, [#allocation3]  }
  0xe5   :  { %152 = dma.done.wait [#allocation3], 32  }
  0xe6   :  { %153 = vsyncadd [#allocation3], 4294967264 }
  0xe7   :  { %115 = vsyncpa [#allocation3], 1 }

</bundles_post_ra>
